<compile_context>
chip_gen: v6e
topology: v6e:2x2x1
jax: 0.10.0
libtpu: 0.0.40
codegen_flags: <defaults>
</compile_context>

<pallas_src>
import math
import functools

import jax
import jax.numpy as jnp
import numpy as np
from jax.experimental import pallas as pl
from jax.experimental.pallas import tpu as pltpu


def _self_attn_kernel(q_ref, k_ref, v_ref,
                      wq_ref, bq_ref, wk_ref, bk_ref, wv_ref, bv_ref,
                      mask_ref, out_ref,
                      kh_scr, vh_scr,
                      *, num_heads, head_size, bf16_exp):
    """One grid step == one batch row x one Lq tile.

    q_ref:   (1, tq, D)  bf16
    k_ref:   (1, L,  D)  bf16   (same block across the qi axis -> DMA'd once per row)
    v_ref:   (1, L,  D)  bf16
    mask_ref:(1, tq, L)  bf16
    out_ref: (1, tq, D)  f32
    kh_scr / vh_scr: (H, L, dh) bf16 VMEM scratch, valid for the current batch row.
    """
    qi = pl.program_id(1)
    _, tq, d = q_ref.shape
    _, lk, _ = k_ref.shape
    h, dh = num_heads, head_size
    inv_sqrt_dh = 1.0 / math.sqrt(dh)

    # --- K/V projection + head split: once per batch row (first Lq tile) ----
    @pl.when(qi == 0)
    def _():
        xk = k_ref[0]                                             # (L, D) bf16
        xv = v_ref[0]
        k_all = jnp.dot(xk, wk_ref[...], preferred_element_type=jnp.float32) + bk_ref[...]
        v_all = jnp.dot(xv, wv_ref[...], preferred_element_type=jnp.float32) + bv_ref[...]
        # (L, D) -> (H, L, dh); dh stays on lanes. Done once per row, reused by
        # every Lq tile (addresses the relayout-copy concern from the review).
        kh_scr[...] = jnp.transpose(k_all.reshape(lk, h, dh), (1, 0, 2)).astype(jnp.bfloat16)
        vh_scr[...] = jnp.transpose(v_all.reshape(lk, h, dh), (1, 0, 2)).astype(jnp.bfloat16)

    # --- Q projection for this Lq tile; fold 1/sqrt(dh) into Q once ---------
    xq = q_ref[0]                                                 # (tq, D) bf16
    q_all = jnp.dot(xq, wq_ref[...], preferred_element_type=jnp.float32) + bq_ref[...]
    q_all = q_all * inv_sqrt_dh
    qh = jnp.transpose(q_all.reshape(tq, h, dh), (1, 0, 2)).astype(jnp.bfloat16)  # (H, tq, dh)

    # Additive mask for this tile only (bf16 in, exact for {0,1} and -10000).
    neg_mask = (1.0 - mask_ref[0]) * (-10000.0)                   # (tq, L) bf16

    # --- attention: all heads batched, bounded to this Lq tile --------------
    # scores[h, q, k] = sum_d qh[h, q, d] * kh[h, k, d]   (no explicit K^T)
    scores = jnp.einsum('hqd,hkd->hqk', qh, kh_scr[...],
                        preferred_element_type=jnp.float32)       # (H, tq, L) f32
    scores = scores + neg_mask[None, :, :]

    # Numerically stable softmax; the divide goes to the EUP slot.
    m = jnp.max(scores, axis=-1, keepdims=True)
    if bf16_exp:
        # v6e/v7x: EUP has bf16 throughput; roughly doubles exp rate.
        e = jnp.exp((scores - m).astype(jnp.bfloat16)).astype(jnp.float32)
    else:
        e = jnp.exp(scores - m)
    probs = e * pl.reciprocal(jnp.sum(e, axis=-1, keepdims=True), approx=True)

    # ctx[h, q, d] = sum_k probs[h, q, k] * vh[h, k, d]
    ctx = jnp.einsum('hqk,hkd->hqd', probs.astype(jnp.bfloat16), vh_scr[...],
                     preferred_element_type=jnp.float32)          # (H, tq, dh)

    # Merge heads back to (tq, D) and emit ONE lane-dense store.
    out_ref[0] = jnp.transpose(ctx, (1, 0, 2)).reshape(tq, d).astype(out_ref.dtype)


def _pick_q_tile(lq, requested):
    """Largest tile <= requested that divides Lq and satisfies the (8,128) rule."""
    if lq <= requested:
        return lq
    for t in (requested, 512, 256, 128, 64, 32, 16, 8):
        if t <= lq and lq % t == 0 and (t % 8 == 0 or t == lq):
            return t
    return lq


def _default_vmem_limit():
    """~48 MiB on v7x (64 MiB physical), 96 MiB on v5e/v6e (128 MiB physical)."""
    cap = 128 * 1024 * 1024
    try:
        cap = int(pltpu.get_tpu_info().vmem_capacity_bytes)
    except Exception:
        pass
    return int(min(96 * 1024 * 1024, cap * 3 // 4))


def bert_self_attention(query_states, key_states, value_states, attention_mask,
                        wq, bq, wk, bk, wv, bv, *, num_heads,
                        q_tile=256, bf16_exp=False, vmem_limit_bytes=None):
    N, Lq, D = query_states.shape
    _, L, _ = key_states.shape
    assert D % num_heads == 0
    head_size = D // num_heads

    tq = _pick_q_tile(Lq, q_tile)
    num_q_tiles = Lq // tq

    if vmem_limit_bytes is None:
        vmem_limit_bytes = _default_vmem_limit()

    # bf16 activations + mask: halve HBM->VMEM traffic and VMEM double-buffer
    # footprint (mask {0,1} is exact in bf16). bf16 weights: MXU-native.
    q_b = query_states.astype(jnp.bfloat16)
    k_b = key_states.astype(jnp.bfloat16)
    v_b = value_states.astype(jnp.bfloat16)
    mask_b = attention_mask.astype(jnp.bfloat16)
    wq_b = wq.astype(jnp.bfloat16)
    wk_b = wk.astype(jnp.bfloat16)
    wv_b = wv.astype(jnp.bfloat16)
    # Biases stay f32 (added after the f32-accumulated matmul); 2-D VMEM tiles.
    bq2 = bq.reshape(1, D).astype(jnp.float32)
    bk2 = bk.reshape(1, D).astype(jnp.float32)
    bv2 = bv.reshape(1, D).astype(jnp.float32)

    kernel = functools.partial(_self_attn_kernel,
                               num_heads=num_heads, head_size=head_size,
                               bf16_exp=bf16_exp)

    q_spec = pl.BlockSpec((1, tq, D), lambda b, qi: (b, qi, 0))
    kv_spec = pl.BlockSpec((1, L, D), lambda b, qi: (b, 0, 0))   # same block over qi
    w_spec = pl.BlockSpec((D, D), lambda b, qi: (0, 0))
    b_spec = pl.BlockSpec((1, D), lambda b, qi: (0, 0))
    mask_spec = pl.BlockSpec((1, tq, L), lambda b, qi: (b, qi, 0))
    out_spec = pl.BlockSpec((1, tq, D), lambda b, qi: (b, qi, 0))

    # Advisory cost estimate so XLA schedules neighbouring ops sensibly.
    flops = 2 * N * (Lq * D * D + 2 * L * D * D) + 4 * N * Lq * L * D
    bytes_accessed = (2 * N * (Lq * D + 2 * L * D)       # bf16 activations in
                      + 2 * 3 * D * D + 4 * 3 * D        # bf16 weights + f32 biases
                      + 2 * N * Lq * L                   # bf16 mask
                      + 4 * N * Lq * D)                  # f32 output
    cost = pl.CostEstimate(flops=flops,
                           transcendentals=N * num_heads * Lq * L,
                           bytes_accessed=bytes_accessed)

    return pl.pallas_call(
        kernel,
        out_shape=jax.ShapeDtypeStruct((N, Lq, D), query_states.dtype),
        grid_spec=pltpu.PrefetchScalarGridSpec(
            num_scalar_prefetch=0,
            grid=(N, num_q_tiles),
            in_specs=[q_spec, kv_spec, kv_spec,
                      w_spec, b_spec, w_spec, b_spec, w_spec, b_spec,
                      mask_spec],
            out_specs=out_spec,
            scratch_shapes=[pltpu.VMEM((num_heads, L, head_size), jnp.bfloat16),
                            pltpu.VMEM((num_heads, L, head_size), jnp.bfloat16)],
        ),
        compiler_params=pltpu.CompilerParams(
            # batch axis independent; qi axis carries the per-row K/V scratch.
            dimension_semantics=("parallel", "arbitrary"),
            vmem_limit_bytes=vmem_limit_bytes),
        cost_estimate=cost,
    )(q_b, k_b, v_b, wq_b, bq2, wk_b, bk2, wv_b, bv2, mask_b)


def _reference(query_states, key_states, value_states, attention_mask,
               wq, bq, wk, bk, wv, bv, num_heads):
    """Plain-JAX f32 reference matching the PyTorch forward (mask=False, eval)."""
    N, Lq, D = query_states.shape
    dh = D // num_heads

    def split_heads(x):
        return x.reshape(N, -1, num_heads, dh).transpose(0, 2, 1, 3)

    Q = split_heads(query_states @ wq + bq)
    K = split_heads(key_states @ wk + bk)
    V = split_heads(value_states @ wv + bv)
    scores = jnp.einsum('nhqd,nhkd->nhqk', Q, K) / math.sqrt(dh)
    scores = scores + ((1.0 - attention_mask[:, None, :, :]) * -10000.0)
    probs = jax.nn.softmax(scores, axis=-1)
    ctx = jnp.einsum('nhqk,nhkd->nhqd', probs, V)
    return ctx.transpose(0, 2, 1, 3).reshape(N, Lq, D)


if __name__ == "__main__":
    # Small config: hidden_size=32, num_attention_heads=4, Lq=16, L=8, batch=4.
    # q_tile=8 forces two Lq tiles per batch row so the per-row K/V scratch
    # reuse path (@pl.when(qi == 0)) is exercised.
    N, Lq, L, D, H = 4, 16, 8, 32, 4

    key = jax.random.PRNGKey(0)
    ks = jax.random.split(key, 10)
    query_states = jax.random.normal(ks[0], (N, Lq, D), dtype=jnp.float32)
    key_states = jax.random.normal(ks[1], (N, L, D), dtype=jnp.float32)
    value_states = jax.random.normal(ks[2], (N, L, D), dtype=jnp.float32)
    attention_mask = (jax.random.uniform(ks[3], (N, Lq, L)) > 0.2).astype(jnp.float32)

    scale = 1.0 / math.sqrt(D)
    wq = jax.random.normal(ks[4], (D, D), dtype=jnp.float32) * scale
    wk = jax.random.normal(ks[5], (D, D), dtype=jnp.float32) * scale
    wv = jax.random.normal(ks[6], (D, D), dtype=jnp.float32) * scale
    bq = jax.random.normal(ks[7], (D,), dtype=jnp.float32) * 0.01
    bk = jax.random.normal(ks[8], (D,), dtype=jnp.float32) * 0.01
    bv = jax.random.normal(ks[9], (D,), dtype=jnp.float32) * 0.01

    out = bert_self_attention(query_states, key_states, value_states,
                              attention_mask, wq, bq, wk, bk, wv, bv,
                              num_heads=H, q_tile=8)
    out = jax.block_until_ready(out)

    ref = _reference(query_states, key_states, value_states, attention_mask,
                     wq, bq, wk, bk, wv, bv, H)
    # bf16 activations/weights (f32 accumulation), f32 softmax -> looser tol.
    np.testing.assert_allclose(np.asarray(out), np.asarray(ref),
                               rtol=5e-2, atol=5e-2)
    print("KERNEL_OK")
</pallas_src>

<mosaic_0001>
module attributes {stable_mosaic.version = 11 : i64} {
  func.func @_self_attn_kernel(%arg0: i32, %arg1: i32, %arg2: memref<1x8x32xbf16, #tpu.memory_space<vmem>>, %arg3: memref<1x8x32xbf16, #tpu.memory_space<vmem>>, %arg4: memref<1x8x32xbf16, #tpu.memory_space<vmem>>, %arg5: memref<32x32xbf16, #tpu.memory_space<vmem>>, %arg6: memref<1x32xf32, #tpu.memory_space<vmem>>, %arg7: memref<32x32xbf16, #tpu.memory_space<vmem>>, %arg8: memref<1x32xf32, #tpu.memory_space<vmem>>, %arg9: memref<32x32xbf16, #tpu.memory_space<vmem>>, %arg10: memref<1x32xf32, #tpu.memory_space<vmem>>, %arg11: memref<1x8x8xbf16, #tpu.memory_space<vmem>>, %arg12: memref<1x8x32xf32, #tpu.memory_space<vmem>>, %arg13: memref<4x8x8xbf16, #tpu.memory_space<vmem>>, %arg14: memref<4x8x8xbf16, #tpu.memory_space<vmem>>) attributes {dimension_semantics = [#tpu.dimension_semantics<parallel>, #tpu.dimension_semantics<arbitrary>], iteration_bounds = array<i64: 4, 2>, scalar_prefetch = 0 : i64, scratch_operands = 2 : i64, tpu.core_type = #tpu.core_type<tc>, window_params = [{transform_indices = @transform_0, window_bounds = array<i64: 1, 8, 32>}, {transform_indices = @transform_1, window_bounds = array<i64: 1, 8, 32>}, {transform_indices = @transform_2, window_bounds = array<i64: 1, 8, 32>}, {pipeline_mode = #tpu.pipeline_mode<synchronous>, transform_indices = @transform_3, window_bounds = array<i64: 32, 32>}, {pipeline_mode = #tpu.pipeline_mode<synchronous>, transform_indices = @transform_4, window_bounds = array<i64: 1, 32>}, {pipeline_mode = #tpu.pipeline_mode<synchronous>, transform_indices = @transform_5, window_bounds = array<i64: 32, 32>}, {pipeline_mode = #tpu.pipeline_mode<synchronous>, transform_indices = @transform_6, window_bounds = array<i64: 1, 32>}, {pipeline_mode = #tpu.pipeline_mode<synchronous>, transform_indices = @transform_7, window_bounds = array<i64: 32, 32>}, {pipeline_mode = #tpu.pipeline_mode<synchronous>, transform_indices = @transform_8, window_bounds = array<i64: 1, 32>}, {transform_indices = @transform_9, window_bounds = array<i64: 1, 8, 8>}, {transform_indices = @transform_10, window_bounds = array<i64: 1, 8, 32>}]} {
    %c0_i32 = arith.constant 0 : i32
    %0 = arith.cmpi eq, %arg1, %c0_i32 : i32
    %1 = arith.extui %0 : i1 to i32
    %c0_i32_0 = arith.constant 0 : i32
    %2 = arith.cmpi ne, %1, %c0_i32_0 : i32
    scf.if %2 {
      %c0_26 = arith.constant 0 : index
      %c0_27 = arith.constant 0 : index
      %c0_28 = arith.constant 0 : index
      %45 = vector.load %arg3[%c0_26, %c0_27, %c0_28] : memref<1x8x32xbf16, #tpu.memory_space<vmem>>, vector<1x8x32xbf16>
      %46 = vector.shape_cast %45 : vector<1x8x32xbf16> to vector<8x32xbf16>
      %c0_29 = arith.constant 0 : index
      %c0_30 = arith.constant 0 : index
      %c0_31 = arith.constant 0 : index
      %47 = vector.load %arg4[%c0_29, %c0_30, %c0_31] : memref<1x8x32xbf16, #tpu.memory_space<vmem>>, vector<1x8x32xbf16>
      %48 = vector.shape_cast %47 : vector<1x8x32xbf16> to vector<8x32xbf16>
      %c0_32 = arith.constant 0 : index
      %c0_33 = arith.constant 0 : index
      %49 = vector.load %arg7[%c0_32, %c0_33] : memref<32x32xbf16, #tpu.memory_space<vmem>>, vector<32x32xbf16>
      %cst_34 = arith.constant dense<0.000000e+00> : vector<8x32xf32>
      %50 = tpu.matmul %46, %49, %cst_34 {dimension_numbers = #tpu.dot_dimension_numbers<[1], [0], [0], [1], [0, 0, 1, 1], [], []>} : vector<8x32xbf16>, vector<32x32xbf16>, vector<8x32xf32> -> vector<8x32xf32>
      %c0_35 = arith.constant 0 : index
      %c0_36 = arith.constant 0 : index
      %51 = vector.load %arg8[%c0_35, %c0_36] : memref<1x32xf32, #tpu.memory_space<vmem>>, vector<1x32xf32>
      %52 = vector.broadcast %51 : vector<1x32xf32> to vector<8x32xf32>
      %53 = arith.addf %50, %52 : vector<8x32xf32>
      %c0_37 = arith.constant 0 : index
      %c0_38 = arith.constant 0 : index
      %54 = vector.load %arg9[%c0_37, %c0_38] : memref<32x32xbf16, #tpu.memory_space<vmem>>, vector<32x32xbf16>
      %cst_39 = arith.constant dense<0.000000e+00> : vector<8x32xf32>
      %55 = tpu.matmul %48, %54, %cst_39 {dimension_numbers = #tpu.dot_dimension_numbers<[1], [0], [0], [1], [0, 0, 1, 1], [], []>} : vector<8x32xbf16>, vector<32x32xbf16>, vector<8x32xf32> -> vector<8x32xf32>
      %c0_40 = arith.constant 0 : index
      %c0_41 = arith.constant 0 : index
      %56 = vector.load %arg10[%c0_40, %c0_41] : memref<1x32xf32, #tpu.memory_space<vmem>>, vector<1x32xf32>
      %57 = vector.broadcast %56 : vector<1x32xf32> to vector<8x32xf32>
      %58 = arith.addf %55, %57 : vector<8x32xf32>
      %59 = vector.shape_cast %53 : vector<8x32xf32> to vector<8x4x8xf32>
      %60 = tpu.transpose %59, [1, 0, 2] : vector<8x4x8xf32> -> vector<4x8x8xf32>
      %61 = arith.truncf %60 : vector<4x8x8xf32> to vector<4x8x8xbf16>
      %c0_42 = arith.constant 0 : index
      %c0_43 = arith.constant 0 : index
      %c0_44 = arith.constant 0 : index
      %62 = vector.load %arg13[%c0_42, %c0_43, %c0_44] : memref<4x8x8xbf16, #tpu.memory_space<vmem>>, vector<4x8x8xbf16>
      tpu.vector_store %arg13[%c0_42, %c0_43, %c0_44], %61 {strides = array<i32>} : memref<4x8x8xbf16, #tpu.memory_space<vmem>>, vector<4x8x8xbf16>,
      %63 = vector.shape_cast %58 : vector<8x32xf32> to vector<8x4x8xf32>
      %64 = tpu.transpose %63, [1, 0, 2] : vector<8x4x8xf32> -> vector<4x8x8xf32>
      %65 = arith.truncf %64 : vector<4x8x8xf32> to vector<4x8x8xbf16>
      %c0_45 = arith.constant 0 : index
      %c0_46 = arith.constant 0 : index
      %c0_47 = arith.constant 0 : index
      %66 = vector.load %arg14[%c0_45, %c0_46, %c0_47] : memref<4x8x8xbf16, #tpu.memory_space<vmem>>, vector<4x8x8xbf16>
      tpu.vector_store %arg14[%c0_45, %c0_46, %c0_47], %65 {strides = array<i32>} : memref<4x8x8xbf16, #tpu.memory_space<vmem>>, vector<4x8x8xbf16>,
    } else {
    }
    %c0 = arith.constant 0 : index
    %c0_1 = arith.constant 0 : index
    %c0_2 = arith.constant 0 : index
    %3 = vector.load %arg2[%c0, %c0_1, %c0_2] : memref<1x8x32xbf16, #tpu.memory_space<vmem>>, vector<1x8x32xbf16>
    %4 = vector.shape_cast %3 : vector<1x8x32xbf16> to vector<8x32xbf16>
    %c0_3 = arith.constant 0 : index
    %c0_4 = arith.constant 0 : index
    %5 = vector.load %arg5[%c0_3, %c0_4] : memref<32x32xbf16, #tpu.memory_space<vmem>>, vector<32x32xbf16>
    %cst = arith.constant dense<0.000000e+00> : vector<8x32xf32>
    %6 = tpu.matmul %4, %5, %cst {dimension_numbers = #tpu.dot_dimension_numbers<[1], [0], [0], [1], [0, 0, 1, 1], [], []>} : vector<8x32xbf16>, vector<32x32xbf16>, vector<8x32xf32> -> vector<8x32xf32>
    %c0_5 = arith.constant 0 : index
    %c0_6 = arith.constant 0 : index
    %7 = vector.load %arg6[%c0_5, %c0_6] : memref<1x32xf32, #tpu.memory_space<vmem>>, vector<1x32xf32>
    %8 = vector.broadcast %7 : vector<1x32xf32> to vector<8x32xf32>
    %9 = arith.addf %6, %8 : vector<8x32xf32>
    %cst_7 = arith.constant 0.353553385 : f32
    %10 = vector.broadcast %cst_7 : f32 to vector<8x32xf32>
    %11 = arith.mulf %9, %10 : vector<8x32xf32>
    %12 = vector.shape_cast %11 : vector<8x32xf32> to vector<8x4x8xf32>
    %13 = tpu.transpose %12, [1, 0, 2] : vector<8x4x8xf32> -> vector<4x8x8xf32>
    %14 = arith.truncf %13 : vector<4x8x8xf32> to vector<4x8x8xbf16>
    %c0_8 = arith.constant 0 : index
    %c0_9 = arith.constant 0 : index
    %c0_10 = arith.constant 0 : index
    %15 = vector.load %arg11[%c0_8, %c0_9, %c0_10] : memref<1x8x8xbf16, #tpu.memory_space<vmem>>, vector<1x8x8xbf16>
    %16 = vector.shape_cast %15 : vector<1x8x8xbf16> to vector<8x8xbf16>
    %cst_11 = arith.constant 1.000000e+00 : bf16
    %17 = vector.broadcast %cst_11 : bf16 to vector<8x8xbf16>
    %18 = arith.subf %17, %16 : vector<8x8xbf16>
    %cst_12 = arith.constant -9.984000e+03 : bf16
    %19 = vector.broadcast %cst_12 : bf16 to vector<8x8xbf16>
    %20 = arith.mulf %18, %19 : vector<8x8xbf16>
    %c0_13 = arith.constant 0 : index
    %c0_14 = arith.constant 0 : index
    %c0_15 = arith.constant 0 : index
    %21 = vector.load %arg13[%c0_13, %c0_14, %c0_15] : memref<4x8x8xbf16, #tpu.memory_space<vmem>>, vector<4x8x8xbf16>
    "tpu.trace_start"() <{level = 10 : i32, message = "hqd,hkd->hqk"}> : () -> ()
    %cst_16 = arith.constant dense<0.000000e+00> : vector<4x8x8xf32>
    %22 = tpu.matmul %14, %21, %cst_16 {dimension_numbers = #tpu.dot_dimension_numbers<[2], [2], [1], [1], [0, 0, 0, 1, 1, 1], [0], [0]>} : vector<4x8x8xbf16>, vector<4x8x8xbf16>, vector<4x8x8xf32> -> vector<4x8x8xf32>
    "tpu.trace_stop"() : () -> ()
    %23 = vector.shape_cast %20 : vector<8x8xbf16> to vector<1x8x8xbf16>
    %24 = arith.extf %23 : vector<1x8x8xbf16> to vector<1x8x8xf32>
    %25 = vector.broadcast %24 : vector<1x8x8xf32> to vector<4x8x8xf32>
    %26 = arith.addf %22, %25 : vector<4x8x8xf32>
    %cst_17 = arith.constant dense<0xFF800000> : vector<4x8xf32>
    %27 = vector.multi_reduction <maximumf>, %26, %cst_17 [2] : vector<4x8x8xf32> to vector<4x8xf32>
    %28 = vector.shape_cast %27 : vector<4x8xf32> to vector<4x8x1xf32>
    %29 = vector.broadcast %28 : vector<4x8x1xf32> to vector<4x8x8xf32>
    %30 = arith.subf %26, %29 : vector<4x8x8xf32>
    %31 = math.exp %30 : vector<4x8x8xf32>
    %cst_18 = arith.constant dense<0.000000e+00> : vector<4x8xf32>
    %32 = vector.multi_reduction <add>, %31, %cst_18 [2] : vector<4x8x8xf32> to vector<4x8xf32>
    %33 = vector.shape_cast %32 : vector<4x8xf32> to vector<4x8x1xf32>
    %34 = tpu.reciprocal %33 {approx = true} : vector<4x8x1xf32> -> vector<4x8x1xf32>
    %35 = vector.broadcast %34 : vector<4x8x1xf32> to vector<4x8x8xf32>
    %36 = arith.mulf %31, %35 : vector<4x8x8xf32>
    %37 = arith.truncf %36 : vector<4x8x8xf32> to vector<4x8x8xbf16>
    %c0_19 = arith.constant 0 : index
    %c0_20 = arith.constant 0 : index
    %c0_21 = arith.constant 0 : index
    %38 = vector.load %arg14[%c0_19, %c0_20, %c0_21] : memref<4x8x8xbf16, #tpu.memory_space<vmem>>, vector<4x8x8xbf16>
    "tpu.trace_start"() <{level = 10 : i32, message = "hqk,hkd->hqd"}> : () -> ()
    %cst_22 = arith.constant dense<0.000000e+00> : vector<4x8x8xf32>
    %39 = tpu.matmul %37, %38, %cst_22 {dimension_numbers = #tpu.dot_dimension_numbers<[2], [1], [1], [2], [0, 0, 0, 1, 1, 2], [0], [0]>} : vector<4x8x8xbf16>, vector<4x8x8xbf16>, vector<4x8x8xf32> -> vector<4x8x8xf32>
    "tpu.trace_stop"() : () -> ()
    %40 = tpu.transpose %39, [1, 0, 2] : vector<4x8x8xf32> -> vector<8x4x8xf32>
    %41 = vector.shape_cast %40 : vector<8x4x8xf32> to vector<8x32xf32>
    %c0_23 = arith.constant 0 : index
    %c0_24 = arith.constant 0 : index
    %c0_25 = arith.constant 0 : index
    %42 = vector.load %arg12[%c0_23, %c0_24, %c0_25] : memref<1x8x32xf32, #tpu.memory_space<vmem>>, vector<1x8x32xf32>
    %43 = vector.shape_cast %42 : vector<1x8x32xf32> to vector<8x32xf32>
    %44 = vector.shape_cast %41 : vector<8x32xf32> to vector<1x8x32xf32>
    tpu.vector_store %arg12[%c0_23, %c0_24, %c0_25], %44 {strides = array<i32>} : memref<1x8x32xf32, #tpu.memory_space<vmem>>, vector<1x8x32xf32>,
    return
  }
  func.func @transform_0(%arg0: i32, %arg1: i32) -> (i32, i32, i32) {
    %c0_i32 = arith.constant 0 : i32
    %c0_i32_0 = arith.constant 0 : i32
    return %arg0, %arg1, %c0_i32 : i32, i32, i32
  }
  func.func @transform_1(%arg0: i32, %arg1: i32) -> (i32, i32, i32) {
    %c0_i32 = arith.constant 0 : i32
    %c0_i32_0 = arith.constant 0 : i32
    %c0_i32_1 = arith.constant 0 : i32
    return %arg0, %c0_i32, %c0_i32_0 : i32, i32, i32
  }
  func.func @transform_2(%arg0: i32, %arg1: i32) -> (i32, i32, i32) {
    %c0_i32 = arith.constant 0 : i32
    %c0_i32_0 = arith.constant 0 : i32
    %c0_i32_1 = arith.constant 0 : i32
    return %arg0, %c0_i32, %c0_i32_0 : i32, i32, i32
  }
  func.func @transform_3(%arg0: i32, %arg1: i32) -> (i32, i32) {
    %c0_i32 = arith.constant 0 : i32
    %c0_i32_0 = arith.constant 0 : i32
    %c0_i32_1 = arith.constant 0 : i32
    return %c0_i32, %c0_i32_0 : i32, i32
  }
  func.func @transform_4(%arg0: i32, %arg1: i32) -> (i32, i32) {
    %c0_i32 = arith.constant 0 : i32
    %c0_i32_0 = arith.constant 0 : i32
    %c0_i32_1 = arith.constant 0 : i32
    return %c0_i32, %c0_i32_0 : i32, i32
  }
  func.func @transform_5(%arg0: i32, %arg1: i32) -> (i32, i32) {
    %c0_i32 = arith.constant 0 : i32
    %c0_i32_0 = arith.constant 0 : i32
    %c0_i32_1 = arith.constant 0 : i32
    return %c0_i32, %c0_i32_0 : i32, i32
  }
  func.func @transform_6(%arg0: i32, %arg1: i32) -> (i32, i32) {
    %c0_i32 = arith.constant 0 : i32
    %c0_i32_0 = arith.constant 0 : i32
    %c0_i32_1 = arith.constant 0 : i32
    return %c0_i32, %c0_i32_0 : i32, i32
  }
  func.func @transform_7(%arg0: i32, %arg1: i32) -> (i32, i32) {
    %c0_i32 = arith.constant 0 : i32
    %c0_i32_0 = arith.constant 0 : i32
    %c0_i32_1 = arith.constant 0 : i32
    return %c0_i32, %c0_i32_0 : i32, i32
  }
  func.func @transform_8(%arg0: i32, %arg1: i32) -> (i32, i32) {
    %c0_i32 = arith.constant 0 : i32
    %c0_i32_0 = arith.constant 0 : i32
    %c0_i32_1 = arith.constant 0 : i32
    return %c0_i32, %c0_i32_0 : i32, i32
  }
  func.func @transform_9(%arg0: i32, %arg1: i32) -> (i32, i32, i32) {
    %c0_i32 = arith.constant 0 : i32
    %c0_i32_0 = arith.constant 0 : i32
    return %arg0, %arg1, %c0_i32 : i32, i32, i32
  }
  func.func @transform_10(%arg0: i32, %arg1: i32) -> (i32, i32, i32) {
    %c0_i32 = arith.constant 0 : i32
    %c0_i32_0 = arith.constant 0 : i32
    return %arg0, %arg1, %c0_i32 : i32, i32, i32
  }
}

</mosaic_0001>

<bundles_post_ra>
// kernel: tpu_custom_call.1
= control target key start
LH: loop header
LB: loop body
LE: loop exit
PB: predicated region body
PF: predicated region fallthrough
CT: control target
= control target key end

     0   :  { %s3190_s0 = inlined_call_operand.vmem [shape: bf16[4,16,32], index: 0, kind: input, shape index: {}]   ;;  %s3191_s1 = inlined_call_operand.vmem [shape: bf16[4,8,32], index: 1, kind: input, shape index: {}]   ;;  %s3192_s2 = inlined_call_operand.hbm [shape: bf16[4,8,32], index: 2, kind: input, shape index: {}]   ;;  %s3193_s3 = inlined_call_operand.hbm [shape: bf16[32,32], index: 3, kind: input, shape index: {}]   ;;  %s3194_s4 = inlined_call_operand.hbm [shape: f32[1,32], index: 4, kind: input, shape index: {}]   ;;  %s3195_s5 = inlined_call_operand.hbm [shape: bf16[32,32], index: 5, kind: input, shape index: {}]   ;;  %s3196_s6 = inlined_call_operand.hbm [shape: f32[1,32], index: 6, kind: input, shape index: {}]   ;;  %s3197_s7 = inlined_call_operand.hbm [shape: bf16[32,32], index: 7, kind: input, shape index: {}]   ;;  %s3198_s8 = inlined_call_operand.hbm [shape: f32[1,32], index: 8, kind: input, shape index: {}]   ;;  %s3199_s9 = inlined_call_operand.vmem [shape: bf16[4,16,8], index: 9, kind: input, shape index: {}]   ;;  %s3200_s10 = inlined_call_operand.hbm [shape: f32[4,16,32], index: 10, kind: output, shape index: {}]  }
   0x1   :  { %3213 = sst [smem:[#allocation29_spill]] %s3190_s0 }
   0x2   :  { %3214 = sst [smem:[#allocation30_spill]] %s3191_s1 }
   0x3   :  { %3215 = sst [smem:[#allocation31_spill]] %s3192_s2 }
   0x4   :  { %3216 = sst [smem:[#allocation32_spill]] %s3193_s3 }
   0x5   :  { %3217 = sst [smem:[#allocation33_spill]] %s3194_s4 }
   0x6   :  { %3218 = sst [smem:[#allocation34_spill]] %s3195_s5 }
   0x7   :  { %3219 = sst [smem:[#allocation35_spill]] %s3196_s6 }
   0x8   :  { %3220 = sst [smem:[#allocation36_spill]] %s3197_s7 }
   0x9   :  { %3221 = sst [smem:[#allocation37_spill]] %s3198_s8 }
   0xa   :  { %3222 = sst [smem:[#allocation38_spill]] %s3199_s9 }
   0xb   :  { %3223 = sst [smem:[#allocation39_spill]] %s3200_s10 }
   0xc   :  { %15 = vsyncpa [#allocation5], 0 }
   0xd   :  { %17 = vsyncpa [#allocation5 + $0x1], 0 }
   0xe   :  { %18 = vsyncpa [#allocation8], 0 }
   0xf   :  { %19 = vsyncpa [#allocation11], 0 }
  0x10   :  { %20 = vsyncpa [#allocation14], 0 }
  0x11   :  { %21 = vsyncpa [#allocation6], 0 }
  0x12   :  { %23 = vsyncpa [#allocation6 + $0x1], 0  ;;  %s2768_s13 = smov 0   ;;  %s2770_s14 = smov 0  }
  0x13   :  { %s2772_s15 = smov 0   ;;  %s2774_s16 = smov 0  }
  0x14   :  { %s2776_s17 = smov 0   ;;  %s2778_s18 = smov 0  }
  0x15   :  { %s2780_s19 = smov 0   ;;  %s2782_s20 = smov 0  }
  0x16   :  { %s2784_s21 = smov 0   ;;  %s2786_s22 = smov 0  }
  0x17   :  { %s2788_s23 = smov 0  }
  0x18 LB: > { %3224 = sst [smem:[#allocation22_spill]] %s2664_s18  ;;  %s3201_s24 = sadd.s32 4294967295, %s2684_s23   ;;  %s2684_s23 = sphi %s2788_s23, %s29_s23   ;;  %s2680_s22 = sphi %s2786_s22, %s3264_s22   ;;  %s2676_s21 = sphi %s2784_s21, %s3263_s21   ;;  %s2672_s20 = sphi %s2782_s20, %s3262_s20   ;;  %s2668_s19 = sphi %s2780_s19, %s3261_s19   ;;  %s2664_s18 = sphi %s2778_s18, %s3260_s18   ;;  %s2660_s17 = sphi %s2776_s17, %s3269_s17   ;;  %s2656_s16 = sphi %s2774_s16, %s3268_s16   ;;  %s2652_s15 = sphi %s2772_s15, %s3267_s15   ;;  %s2648_s14 = sphi %s2770_s14, %s3266_s14   ;;  %s2644_s13 = sphi %s2768_s13, %s3265_s13  }
  0x19   : > { %3225 = sst [smem:[#allocation23_spill]] %s2668_s19  ;;  %p2009_p0 = scmp.ge.s32.totalorder %s2684_s23, 1 }
  0x1a   : > { %3226 = sst [smem:[#allocation24_spill]] %s2676_s21  ;;  %p2827_p1 = scmp.eq.s32.totalorder %s3201_s24, 0 }
  0x1b   : > { %3227 = sst [smem:[#allocation25_spill]] %s2680_s22  ;;  %p308_p2 = scmp.lt.s32.totalorder %s2684_s23, 9 }
  0x1c   : > { %s3228_s25 = scalar_select %p2827_p1, 1, 0 }
  0x1d   : > { %p2832_p3 = pnand %p2009_p0, %p308_p2  ;;  %s2686_s27 = smov [#allocation7]  }
  0x1e   : > { %s320_s28 = sshll.u32 %s2686_s27, 4  ;;  %s2687_s30 = smov [#allocation10]   ;;  %s321_s28 = int_to_ptr.vmem [resolvable:$true] %s320_s28 }
  0x1f   : > { %s3229_s26 = scalar_select %p2832_p3, 1, 0 }
  0x20   : > { %p2192_p4 = pneg %p2832_p3  ;;  %s344_s11 = sshll.u32 %s2687_s30, 4  ;;  %s345_s11 = int_to_ptr.vmem [resolvable:$true] %s344_s11 }
  0x21   : > { %s2688_s12 = smov [#allocation13]   ;;  %s2379_s27 = scalar_lea.vmem %s321_s28, 256 }
  0x22   : > { %p2840_p5 = pnand %p2192_p4, %p2827_p1  ;;  %s368_s24 = sshll.u32 %s2688_s12, 4  ;;  %s369_s24 = int_to_ptr.vmem [resolvable:$true] %s368_s24 }
  0x23   : > { %p2380_p7 = scmp.ne.s32.totalorder %s321_s28, %s2379_s27  ;;  %p2387_p10 = scmp.lt.s32.totalorder %s321_s28, %s321_s28 }
  0x24   : > { %p2846_p6 = pneg %p2840_p5  ;;  %p2388_p11 = scmp.lt.s32.totalorder %s2379_s27, %s2379_s27 }
  0x26   : > { %p2382_p8 = pnand %p2380_p7, %p2846_p6  ;;  %p2389_p12 = por %p2388_p11, %p2387_p10 }
  0x28   : > { %p2383_p9 = pneg %p2382_p8 }
  0x2a   : > { %p2390_p13 = pnand %p2389_p12, %p2383_p9 }
  0x2c   : > { %2393 = shalt.err (!%p2390_p13)
}
  0x2d   : > { %s2689_s30 = smov 64   ;;  %s2690_s12 = smov 4  }
  0x2e   : > { %s3232_s3 = sld [smem:[#allocation32_spill]]  ;;  %s2405_s1 = scalar_lea.vmem %s345_s11, 256 }
  0x2f   : > { %p2406_p0 = scmp.ne.s32.totalorder %s345_s11, %s2405_s1  ;;  %p2413_p7 = scmp.lt.s32.totalorder %s345_s11, %s345_s11 }
  0x30   : > { %p2414_p8 = scmp.lt.s32.totalorder %s2405_s1, %s2405_s1 }
  0x31   : > { %p2408_p2 = pnand %p2406_p0, %p2846_p6 }
  0x32   : > { %p2415_p3 = por %p2414_p8, %p2413_p7 }
  0x33   : > { %p2409_p4 = pneg %p2408_p2 }
  0x34   : > { %2195 = dma.hbm_to_vmem [thread:$0]  (!%p2840_p5), %s3232_s3, 256, %s321_s28, [#allocation8], %s2689_s30, %s2689_s30, %s2690_s12  }
  0x35   : > { %p2416_p10 = pnand %p2415_p3, %p2409_p4 }
  0x37   : > { %2419 = shalt.err (!%p2416_p10)
}
  0x38   : > { %s3233_s5 = sld [smem:[#allocation34_spill]]  ;;  %s2431_s0 = scalar_lea.vmem %s369_s24, 256 }
  0x39   : > { %p2432_p9 = scmp.ne.s32.totalorder %s369_s24, %s2431_s0  ;;  %p2439_p13 = scmp.lt.s32.totalorder %s369_s24, %s369_s24 }
  0x3a   : > { %p2440_p0 = scmp.lt.s32.totalorder %s2431_s0, %s2431_s0 }
  0x3b   : > { %p2434_p11 = pnand %p2432_p9, %p2846_p6 }
  0x3c   : > { %p2441_p2 = por %p2440_p0, %p2439_p13 }
  0x3d   : > { %p2435_p12 = pneg %p2434_p11 }
  0x3e   : > { %2201 = dma.hbm_to_vmem [thread:$0]  (!%p2840_p5), %s3233_s5, 256, %s345_s11, [#allocation11], %s2689_s30, %s2689_s30, %s2690_s12  }
  0x3f   : > { %p2442_p1 = pnand %p2441_p2, %p2435_p12 }
  0x41   : > { %2445 = shalt.err (!%p2442_p1)
}
  0x42   : > { %s3234_s7 = sld [smem:[#allocation36_spill]]  ;;  %s2691_s19 = smov [#allocation9]  }
  0x43   : > { %s334_s28 = sshll.u32 %s2691_s19, 4  ;;  %s2692_s11 = smov [#allocation12]   ;;  %s335_s28 = int_to_ptr.vmem [resolvable:$true] %s334_s28 }
  0x44   : > { %s358_s27 = sshll.u32 %s2692_s11, 4  ;;  %s2457_s3 = scalar_lea.vmem %s335_s28, 16  ;;  %s359_s27 = int_to_ptr.vmem [resolvable:$true] %s358_s27 }
  0x45   : > { %p2458_p3 = scmp.ne.s32.totalorder %s335_s28, %s2457_s3  ;;  %s2464_s0 = scalar_lea.vmem %s335_s28, 32 }
  0x46   : > { %p2465_p8 = scmp.lt.s32.totalorder %s335_s28, %s335_s28  ;;  %p2466_p1 = scmp.lt.s32.totalorder %s2464_s0, %s2457_s3 }
  0x47   : > { %p2460_p4 = pnand %p2458_p3, %p2846_p6 }
  0x48   : > { %2207 = dma.hbm_to_vmem [thread:$0]  (!%p2840_p5), %s3234_s7, 256, %s369_s24, [#allocation14], %s2689_s30, %s2689_s30, %s2690_s12  }
  0x49   : > { %p2461_p7 = pneg %p2460_p4  ;;  %p2467_p10 = por %p2466_p1, %p2465_p8 }
  0x4b   : > { %p2468_p9 = pnand %p2467_p10, %p2461_p7 }
  0x4d   : > { %2471 = shalt.err (!%p2468_p9)
}
  0x4e   : > { %s3235_s4 = sld [smem:[#allocation33_spill]]  ;;  %s2483_s30 = scalar_lea.vmem %s359_s27, 16 }
  0x4f   : > { %p2484_p11 = scmp.ne.s32.totalorder %s359_s27, %s2483_s30  ;;  %s2490_s12 = scalar_lea.vmem %s359_s27, 32 }
  0x50   : > { %p2491_p0 = scmp.lt.s32.totalorder %s359_s27, %s359_s27  ;;  %p2492_p2 = scmp.lt.s32.totalorder %s2490_s12, %s2483_s30 }
  0x51   : > { %p2486_p12 = pnand %p2484_p11, %p2846_p6 }
  0x52   : > { %p2493_p3 = por %p2492_p2, %p2491_p0 }
  0x53   : > { %p2487_p13 = pneg %p2486_p12 }
  0x54   : > { %2198 = dma.hbm_to_vmem [thread:$0]  (!%p2840_p5), %s3235_s4, 16, %s335_s28, [#allocation8]  }
  0x55   : > { %p2494_p4 = pnand %p2493_p3, %p2487_p13 }
  0x57   : > { %2497 = shalt.err (!%p2494_p4)
}
  0x58   : > { %s3236_s6 = sld [smem:[#allocation35_spill]]  ;;  %s2693_s19 = smov [#allocation15]  }
  0x59   : > { %s382_s28 = sshll.u32 %s2693_s19, 4  ;;  %s383_s28 = int_to_ptr.vmem [resolvable:$true] %s382_s28 }
  0x5a   : > { %s2509_s11 = scalar_lea.vmem %s383_s28, 16  ;;  %s2516_s0 = scalar_lea.vmem %s383_s28, 32 }
  0x5b   : > { %p2510_p7 = scmp.ne.s32.totalorder %s383_s28, %s2509_s11  ;;  %p2517_p10 = scmp.lt.s32.totalorder %s383_s28, %s383_s28 }
  0x5c   : > { %p2518_p9 = scmp.lt.s32.totalorder %s2516_s0, %s2509_s11 }
  0x5d   : > { %p2512_p8 = pnand %p2510_p7, %p2846_p6 }
  0x5e   : > { %2204 = dma.hbm_to_vmem [thread:$0]  (!%p2840_p5), %s3236_s6, 16, %s359_s27, [#allocation11]  }
  0x5f   : > { %p2513_p1 = pneg %p2512_p8  ;;  %p2519_p11 = por %p2518_p9, %p2517_p10 }
  0x61   : > { %p2520_p12 = pnand %p2519_p11, %p2513_p1 }
  0x63   : > { %2523 = shalt.err (!%p2520_p12)
}
  0x64   : > { %s3237_s8 = sld [smem:[#allocation37_spill]]  ;;  %s2008_s10 = sadd.s32 4294967294, %s2684_s23  }
  0x65   : > { %s38_s29 = sadd.s32 1, %s2676_s21  ;;  %s41_s27 = sadd.s32 1, %s2680_s22 }
  0x66   : > { %p39_p6 = scmp.ge.s32.totalorder %s38_s29, 2  ;;  %s102_s30 = sadd.s32 1, %s2664_s18 }
  0x67   : > { %p109_p13 = scmp.ne.s32.totalorder %s2664_s18, %s2660_s17  ;;  %p110_p0 = scmp.eq.s32.totalorder %s2684_s23, 0 }
  0x68   : > { %s3271_s29 = smov (%p39_p6, %s38_s29), 0  ;;  %s3273_s27 = smov (!%p39_p6, %s41_s27), %s2680_s22 }
  0x69   : > { %3238 = sst [smem:[#allocation26_spill]] %s3271_s29  ;;  %p115_p2 = scmp.ne.s32.totalorder %s2660_s17, %s2656_s16 }
  0x6a   : > { %2210 = dma.hbm_to_vmem [thread:$0]  (!%p2840_p5), %s3237_s8, 16, %s383_s28, [#allocation14]  }
  0x6b   : > { %p43_p5 = scmp.ge.s32.totalorder %s3273_s27, 4  ;;  %s280_s12 = ssub.s32 %s2676_s21, %s3271_s29 }
  0x6c   : > { %p2906_p3 = por %p110_p0, %p109_p13  ;;  %p3240_p4 = scmp.ne.s32.totalorder %s3228_s25, 0 }
  0x6d   : > { %s3275_s27 = smov (%p43_p5, %s3273_s27), 0  ;;  %s284_s19 = sadd.s32 1, %s2652_s15 }
  0x6e   : > { %p2912_p7 = por %p3240_p4, %p115_p2  ;;  %3242 = sst [smem:[#allocation27_spill]] %s3275_s27 }
  0x6f   : > { %p294_p8 = scmp.ne.s32.totalorder %s2652_s15, %s2648_s14  ;;  %s99_s16 = ssub.s32 %s2680_s22, %s3275_s27 }
  0x70   : > { %s3243_s28 = sadd.s32 4294967295, %s2684_s23   ;;  %p100_p10 = scmp.eq.s32.totalorder %s99_s16, 0 }
  0x71   : > { %p295_p1 = scmp.eq.s32.totalorder %s3243_s28, 7  ;;  %s281_s11 = sor.u32 %s280_s12, %s99_s16 }
  0x72   : > { %p282_p9 = scmp.eq.s32.totalorder %s281_s11, 0  ;;  %p300_p12 = scmp.ne.s32.totalorder %s2648_s14, %s2644_s13 }
  0x73   : > { %p2925_p11 = por %p295_p1, %p294_p8  ;;  %p301_p6 = scmp.eq.s32.totalorder %s2008_s10, 7 }
  0x74   : > { %s2930_s1 = scalar_select %p100_p10, %s2664_s18, %s102_s30  }
  0x75   : > { %s2933_s24 = scalar_select %p282_p9, %s2652_s15, %s284_s19  }
  0x76   : > { %3245 = sst [smem:[#allocation28_spill]] %s2930_s1  ;;  %p2225_p13 = scmp.lt.s32.totalorder %s2684_s23, 8 }
  0x77   : > { %s411_s4 = sand.u32 1, %s2664_s18   ;;  %p2939_p0 = por %p301_p6, %p300_p12 }
  0x78   : > { %s2017_s28 = sshll.u32 %s411_s4, 2  ;;  %s2018_s6 = sshll.u32 %s2680_s22, 6 }
  0x79   : > { %s3247_s2 = sld [smem:[#allocation31_spill]]  ;;  %s415_s7 = scalar_lea.vmem [#allocation4], %s2017_s28 }
  0x7a   : > { %s422_s8 = sshll.u32 %s415_s7, 4  ;;  %p2949_p2 = pnand %p2225_p13, %p2906_p3  ;;  %s423_s8 = int_to_ptr.vmem [resolvable:$true] %s422_s8 }
  0x7b   : > { %s412_s10 = scalar_lea.sflag [#allocation5], %s411_s4  ;;  %s2537_s19 = scalar_lea.vmem %s423_s8, 64 }
  0x7c   : > { %p2526_p5 = pneg %p2949_p2  ;;  %p2538_p4 = scmp.ne.s32.totalorder %s423_s8, %s2537_s19 }
  0x7d   : > { %s2694_s27 = smov [#allocation4]  }
  0x7e   : > { %p2540_p8 = pnand %p2538_p4, %p2526_p5  ;;  %s2542_s29 = sshll.u32 %s2694_s27, 4  ;;  %s2543_s29 = int_to_ptr.vmem [resolvable:$false] %s2542_s29 }
  0x7f   : > { %s420_s11 = scalar_lea.hbm %s3247_s2, %s2018_s6  ;;  %s2544_s6 = scalar_lea.vmem %s2543_s29, 128 }
  0x80   : > { %p2541_p1 = pneg %p2540_p8  ;;  %p2545_p10 = scmp.lt.s32.totalorder %s423_s8, %s2543_s29 }
  0x81   : > { %p2546_p9 = scmp.lt.s32.totalorder %s2544_s6, %s2537_s19 }
  0x83   : > { %p2547_p12 = por %p2546_p9, %p2545_p10 }
  0x85   : > { %p2548_p3 = pnand %p2547_p12, %p2541_p1 }
  0x87   : > { %2551 = shalt.err (!%p2548_p3)
}
  0x88   : > { %2214 = dma.hbm_to_vmem [thread:$0]  (!%p2949_p2), %s420_s11, 64, %s423_s8, %s412_s10  }
  0x89   : > { %p3249_p6 = scmp.ne.s32.totalorder %s3229_s26, 0 }
  0x8a   : > { %s444_s4 = sand.u32 (!%p3249_p6), 1, %s2660_s17  }
  0x8b   : > { %442 = sbr.rel (%p3249_p6) target bundleno = 1723 (0x6bb), region = 60  ;;  %s2960_s7 = sshll.u32 (!%p3249_p6), %s444_s4, 2 }
  0x8c   : > { %s445_s27 = scalar_lea.sflag (!%p3249_p6), [#allocation5], %s444_s4 }
  0x90   : > { %2623 = dma.done.wait (%p2912_p7), %s445_s27, 64  }
  0x91   : > { %2625 = vsyncadd (%p2912_p7), %s445_s27, 4294967232  ;;  %p3250_p13 = scmp.ne.s32.totalorder %s3228_s25, 0 }
  0x93   : > { %2627 = dma.done.wait (%p3250_p13), [#allocation8], 272  }
  0x94   : > { %2629 = vsyncadd (%p3250_p13), [#allocation8], 4294967024 }
  0x95   : > { %2631 = dma.done.wait (%p3250_p13), [#allocation11], 272  }
  0x96   : > { %2633 = vsyncadd (%p3250_p13), [#allocation11], 4294967024 }
  0x97   : > { %2635 = dma.done.wait (%p3250_p13), [#allocation14], 272  }
  0x98   : > { %2637 = vsyncadd (%p3250_p13), [#allocation14], 4294967024  ;;  %s3251_s8 = sld [smem:[#allocation23_spill]]  ;;  %s3210_s26 = sand.u32 1, %s2648_s14  }
  0x99   : > { %p529_p7 = scmp.lt.s32.totalorder %s2672_s20, 3  ;;  %s2983_s29 = sshll.u32 %s3210_s26, 3 }
  0x9a   : > { %s3252_s10 = sld [smem:[#allocation30_spill]]  ;;  %s528_s18 = scalar_lea.vmem [#allocation16], %s2983_s29 }
  0x9b   : > { %s530_s9 = scalar_select %p529_p7, %s2672_s20, 3 }
  0x9c   : > { %s3253_s3 = sld [smem:[#allocation29_spill]] }
  0x9d   : > { %s2028_s12 = sshll.u32 %s530_s9, 1  ;;  %s2030_s16 = sshll.u32 %s530_s9, 2 }
  0x9e   : > { %p531_p2 = scmp.lt.s32.totalorder %s3251_s8, 1  ;;  %s3254_s21 = sld [smem:[#allocation38_spill]] }
  0x9f   : > { %p2033_p5 = scmp.ne.s32.totalorder %s3251_s8, 0 }
  0xa0   : > { %s532_s28 = scalar_select %p531_p2, %s3251_s8, 1 }
  0xa1   : > { %s540_s19 = scalar_lea.vmem %s3252_s10, %s2030_s16  ;;  %555 = sbr.rel (%p2033_p5) target bundleno = 516 (0x204), region = 92 }
  0xa2   : > { %s534_s11 = sadd.s32 %s2028_s12, %s532_s28  ;;  %s2697_s22 = smov (!%p2033_p5), 104  }
  0xa3   : > { %s2029_s6 = sshll.u32 %s534_s11, 2 }
  0xa4   : > { %s2994_s2 = scalar_lea.vmem %s3253_s3, %s2029_s6  ;;  %s2999_s1 = scalar_lea.vmem %s3254_s21, %s2029_s6 }
  0xa5   : > { %s3255_s21 = scalar_lea.vmem (!%p2033_p5), [#allocation4], %s2960_s7  ;;  %s2698_s3 = smov (!%p2033_p5), 120  }
  0xa6   : > { %v2346_v0 = vld [vmem:[#allocation10 + $0x8] sm:$0xff]   ;;  %v2695_v1 = vmov 0.0   ;;  %v2347_v2 = vld [vmem:[#allocation13 + $0x8] sm:$0xff]   ;;  %vm2696_vm0 = vmmov 0   ;;  %v2349_v4 = vld [vmem:[#allocation13] sm:$0xff]   ;;  %vm581_vm1 = vcmask 261120   ;;  %v706_v21 = vlaneseq }
  0xa7   : > { %2092 = vmatprep.subr.bf16.mxu0 %v2695_v1  ;;  %2100 = vmatprep.subr.bf16.mxu1 %v2695_v1  ;;  %v2348_v3 = vld [vmem:[#allocation10] sm:$0xff]   ;;  %v2034_v7 = vld [vmem:[#allocation12] ss:$0 sm:$0xff]  ;;  %s2699_s7 = smov 112   ;;  %v2700_v19 = vmov 1983009808  }
  0xa8   : > { %2093 = vmatpush3.bf16.msra.mxu0 %v2346_v0  ;;  %2096 = vmatprep.mubr.msk.bf16.mxu0 %vm2696_vm0, %v2695_v1  ;;  %v556_v5 = vld [vmem:[%s540_s19] sm:$0xf]  ;;  %v2038_v9 = vld [vmem:[#allocation15] ss:$0 sm:$0xff]  ;;  %v704_v20 = vunpack.c.l.s4 %v2700_v19  ;;  %v2701_v22 = vmov 1934713408  }
  0xa9   : > { %2101 = vmatpush3.bf16.msra.mxu1 %v2347_v2  ;;  %2094 = vmatprep.subr.bf16.mxu0 %v2695_v1  ;;  %v557_v6 = vld [vmem:[%s3255_s21] sm:$0xf]  ;;  %v736_v23 = vunpack.c.l.s4 %v2701_v22  ;;  %v707_v25 = vshrl.u32 %v706_v21, 7  ;;  %vm841_vm2 = vcmask 60416  }
  0xaa   : > { %2102 = vmatprep.subr.bf16.mxu1 %v2695_v1  ;;  %2104 = vmatprep.mubr.msk.bf16.mxu1 %vm2696_vm0, %v2695_v1  ;;  %v705_v24 = vunpack.c.0.s8 %v704_v20 }
  0xab   : > { %v737_v28 = vunpack.c.0.s8 %v736_v23 }
  0xac   : > { %2095 = vmatpush3.bf16.msra.mxu0 %v2348_v3  ;;  %v708_v29 = vsub.s32 %v705_v24, %v707_v25 }
  0xad   : > { %2103 = vmatpush3.bf16.msra.mxu1 %v2349_v4  ;;  %v3005_v36 = vsub.s32 %v737_v28, %v707_v25 }
  0xaf   : > { %2097 = vmatmul.mubr.msk.bf16.vlgmr.msra.gmra.mxu0 %vm581_vm1, %v556_v5 }
  0xb0   : > { %2105 = vmatmul.mubr.msk.bf16.vlgmr.msra.gmra.mxu1 %vm581_vm1, %v557_v6 }
 0x16f   : > { %v619_v8 = vpop.f32.mrf.mxu0 }
 0x170   : > { %v620_v10 = vadd.f32 %v2034_v7, %v619_v8  ;;  %v685_v11 = vpop.f32.mrf.mxu1 }
 0x171   : > { %v2098_v12 = vpop.f32.mrf.mxu0  ;;  %v686_v13 = vadd.f32 %v2038_v9, %v685_v11 }
 0x172   : > { %v2106_v14 = vpop.f32.mrf.mxu1  ;;  %698 = vrot.lane.b32.xlu1 %v620_v10, %s2697_s22  ;;  %692 = vrot.lane.b32.xlu0 %v620_v10, %s2698_s3 }
 0x173   : > { %v622_v15 = vpop.f32.mrf.mxu0 }
 0x174   : > { %v688_v16 = vpop.f32.mrf.mxu1 }
 0x175   : > { %v2099_v17 = vpop.f32.mrf.mxu0 }
 0x176   : > { %v2107_v18 = vpop.f32.mrf.mxu1  ;;  %847 = vrot.lane.b32.xlu1 %v686_v13, %s2698_s3  ;;  %695 = vrot.lane.b32.xlu0 %v620_v10, %s2699_s7 }
 0x17a   : > { %853 = vrot.lane.b32.xlu1 %v686_v13, %s2697_s22  ;;  %850 = vrot.lane.b32.xlu0 %v686_v13, %s2699_s7 }
 0x1e4   : > { %v699_v26 = vpop.permute.xlu1 %698  ;;  %v693_v27 = vpop.permute.xlu0 %692 }
 0x1e5   : > { %v717_v30 = vcombine.low %v693_v27, %v699_v26  ;;  %v718_v31 = vcombine.high %v693_v27, %v699_v26 }
 0x1e7   : > { %v725_v37 = vrot.slane %v717_v30, %v708_v29  ;;  %v732_v38 = vrot.slane %v718_v31, %v708_v29 }
 0x1e8   : > { %v848_v32 = vpop.permute.xlu1 %847  ;;  %v696_v33 = vpop.permute.xlu0 %695 }
 0x1e9   : > { %v701_v34 = vcombine.low %v620_v10, %v696_v33  ;;  %v702_v35 = vcombine.high %v620_v10, %v696_v33 }
 0x1eb   : > { %v709_v39 = vrot.slane %v701_v34, %v708_v29  ;;  %v716_v40 = vrot.slane %v702_v35, %v708_v29 }
 0x1ec   : > { %v854_v41 = vpop.permute.xlu1 %853  ;;  %v851_v42 = vpop.permute.xlu0 %850 }
 0x1ed   : > { %v733_v43 = vcombine.low %v709_v39, %v725_v37  ;;  %v734_v44 = vcombine.high %v709_v39, %v725_v37  ;;  %v749_v45 = vcombine.low %v716_v40, %v732_v38  ;;  %v750_v46 = vcombine.high %v716_v40, %v732_v38 }
 0x1ee   : > { %v872_v47 = vcombine.low %v848_v32, %v854_v41  ;;  %v873_v48 = vcombine.high %v848_v32, %v854_v41  ;;  %v856_v49 = vcombine.low %v686_v13, %v851_v42  ;;  %v857_v50 = vcombine.high %v686_v13, %v851_v42 }
 0x1ef   : > { %v741_v51 = vrot.slane %v733_v43, %v3005_v36  ;;  %v748_v52 = vrot.slane %v734_v44, %v3005_v36  ;;  %v757_v53 = vrot.slane %v749_v45, %v3005_v36  ;;  %v764_v54 = vrot.slane %v750_v46, %v3005_v36 }
 0x1f0   : > { %v880_v55 = vrot.slane %v872_v47, %v708_v29  ;;  %v887_v56 = vrot.slane %v873_v48, %v708_v29  ;;  %v864_v57 = vrot.slane %v856_v49, %v708_v29  ;;  %v871_v58 = vrot.slane %v857_v50, %v708_v29 }
 0x1f1   : > { %v769_v59 = vcombine.low %v741_v51, %v748_v52  ;;  %v2042_v60 = vcombine.high %v741_v51, %v748_v52  ;;  %v785_v61 = vcombine.low %v757_v53, %v764_v54  ;;  %v2043_v62 = vcombine.high %v757_v53, %v764_v54 }
 0x1f2   : > { %v888_v63 = vcombine.low %v864_v57, %v880_v55  ;;  %v889_v0 = vcombine.high %v864_v57, %v880_v55  ;;  %v904_v1 = vcombine.low %v871_v58, %v887_v56  ;;  %v905_v2 = vcombine.high %v871_v58, %v887_v56 }
 0x1f3   : > { %v776_v3 = vrot.slane %v769_v59, %v708_v29  ;;  %v784_v4 = vrot.slane %v2042_v60, %v708_v29  ;;  %v792_v5 = vrot.slane %v785_v61, %v708_v29  ;;  %v800_v6 = vrot.slane %v2043_v62, %v708_v29 }
 0x1f4   : > { %v896_v7 = vrot.slane %v888_v63, %v3005_v36  ;;  %v903_v8 = vrot.slane %v889_v0, %v3005_v36  ;;  %v912_v9 = vrot.slane %v904_v1, %v3005_v36  ;;  %v919_v10 = vrot.slane %v905_v2, %v3005_v36 }
 0x1f5   : > { %v801_v11 = vcombine.low %v776_v3, %v784_v4  ;;  %v802_v12 = vcombine.high %v776_v3, %v784_v4  ;;  %v817_v13 = vcombine.low %v792_v5, %v800_v6  ;;  %v818_v14 = vcombine.high %v792_v5, %v800_v6 }
 0x1f6   : > { %v924_v15 = vcombine.low %v896_v7, %v903_v8  ;;  %v2044_v16 = vcombine.high %v896_v7, %v903_v8  ;;  %v940_v17 = vcombine.low %v912_v9, %v919_v10  ;;  %v2045_v18 = vcombine.high %v912_v9, %v919_v10 }
 0x1f7   : > { %v809_v19 = vrot.slane %v801_v11, %v3005_v36  ;;  %v816_v20 = vrot.slane %v802_v12, %v3005_v36  ;;  %v825_v21 = vrot.slane %v817_v13, %v3005_v36  ;;  %v832_v22 = vrot.slane %v818_v14, %v3005_v36 }
 0x1f8   : > { %v931_v23 = vrot.slane %v924_v15, %v708_v29  ;;  %v939_v24 = vrot.slane %v2044_v16, %v708_v29  ;;  %v947_v25 = vrot.slane %v940_v17, %v708_v29  ;;  %v955_v26 = vrot.slane %v2045_v18, %v708_v29 }
 0x1f9   : > { %v833_v27 = vcombine.low %v809_v19, %v825_v21  ;;  %v834_v28 = vcombine.high %v809_v19, %v825_v21  ;;  %v835_v30 = vcombine.low %v816_v20, %v832_v22  ;;  %v836_v31 = vcombine.high %v816_v20, %v832_v22 }
 0x1fa   : > { %v956_v32 = vcombine.low %v931_v23, %v939_v24  ;;  %v957_v33 = vcombine.high %v931_v23, %v939_v24  ;;  %v972_v34 = vcombine.low %v947_v25, %v955_v26  ;;  %v973_v35 = vcombine.high %v947_v25, %v955_v26 }
 0x1fb   : > { %v837_v37 = vpack.c.bf16 %v833_v27, %v833_v27  ;;  %v838_v38 = vpack.c.bf16 %v834_v28, %v834_v28  ;;  %v839_v39 = vpack.c.bf16 %v835_v30, %v835_v30  ;;  %v840_v40 = vpack.c.bf16 %v836_v31, %v836_v31 }
 0x1fc   : > { %v964_v41 = vrot.slane %v956_v32, %v3005_v36  ;;  %v971_v42 = vrot.slane %v957_v33, %v3005_v36  ;;  %v980_v43 = vrot.slane %v972_v34, %v3005_v36  ;;  %v987_v29 = vrot.slane %v973_v35, %v3005_v36 }
 0x1fd   : > { %842 = vst.msk [vmem:[#allocation2] sm:$0xf] %vm841_vm2, %v837_v37  ;;  %843 = vst.msk [vmem:[#allocation2 + $0x4] sm:$0xf] %vm841_vm2, %v838_v38 }
 0x1fe   : > { %844 = vst.msk [vmem:[#allocation2 + $0x8] sm:$0xf] %vm841_vm2, %v839_v39  ;;  %845 = vst.msk [vmem:[#allocation2 + $0xc] sm:$0xf] %vm841_vm2, %v840_v40  ;;  %v988_v44 = vcombine.low %v964_v41, %v980_v43  ;;  %v989_v45 = vcombine.high %v964_v41, %v980_v43  ;;  %v990_v46 = vcombine.low %v971_v42, %v987_v29 }
 0x1ff   : > { %v991_v47 = vcombine.high %v971_v42, %v987_v29 }
 0x200   : > { %v992_v48 = vpack.c.bf16 %v988_v44, %v988_v44  ;;  %v993_v49 = vpack.c.bf16 %v989_v45, %v989_v45  ;;  %v994_v50 = vpack.c.bf16 %v990_v46, %v990_v46 }
 0x201   : > { %v995_v51 = vpack.c.bf16 %v991_v47, %v991_v47 }
 0x202   : > { %996 = vst.msk [vmem:[#allocation3] sm:$0xf] %vm841_vm2, %v992_v48  ;;  %997 = vst.msk [vmem:[#allocation3 + $0x4] sm:$0xf] %vm841_vm2, %v993_v49 }
 0x203   : > { %998 = vst.msk [vmem:[#allocation3 + $0x8] sm:$0xf] %vm841_vm2, %v994_v50  ;;  %999 = vst.msk [vmem:[#allocation3 + $0xc] sm:$0xf] %vm841_vm2, %v995_v51 }
 0x204 PF: > { %v2350_v36 = vld [vmem:[#allocation7 + $0x8] sm:$0xff]   ;;  %v2702_v52 = vmov 0.0   ;;  %v2351_v53 = vld [vmem:[#allocation7] sm:$0xff]   ;;  %vm2703_vm3 = vmmov 0   ;;  %v1000_v54 = vld [vmem:[%s2994_s2] sm:$0xf]  ;;  %v1084_v4 = vlaneseq }
 0x205   : > { %2108 = vmatprep.subr.bf16.mxu0 %v2702_v52  ;;  %2116 = vmatprep.subr.bf16.mxu1 %v2702_v52  ;;  %vm1024_vm4 = vcmask 261120   ;;  %v2046_v55 = vld [vmem:[#allocation9] ss:$0 sm:$0xff]  ;;  %s2704_s8 = smov 104   ;;  %s2705_s26 = smov 120   ;;  %vm1227_vm5 = vcmask 64512  }
 0x206   : > { %2109 = vmatpush3.bf16.msra.mxu0 %v2350_v36  ;;  %2112 = vmatprep.mubr.msk.bf16.mxu0 %vm2703_vm3, %v2702_v52  ;;  %v1222_v62 = vld [vmem:[#allocation2] sm:$0xf]  ;;  %v1223_v63 = vld [vmem:[#allocation2 + $0x4] sm:$0xf]  ;;  %s2706_s2 = smov 112   ;;  %v1085_v8 = vshrl.u32 %v1084_v4, 7 }
 0x207   : > { %2110 = vmatprep.subr.bf16.mxu0 %v2702_v52  ;;  %2118 = vmatprep.mubr.msk.bf16.mxu1 %vm2703_vm3, %v2702_v52  ;;  %v1232_v0 = vsel %vm1227_vm5, %v1222_v62, 0  ;;  %v1278_v1 = vsel %vm1227_vm5, %v1223_v63, 0  ;;  %v2707_v2 = vmov 1983009808   ;;  %v2708_v5 = vmov 1934713408  }
 0x208   : > { %2117 = vmatpush3.bf16.xpose.msra.mxu1 %v1232_v0  ;;  %v1082_v3 = vunpack.c.l.s4 %v2707_v2  ;;  %v1114_v6 = vunpack.c.l.s4 %v2708_v5  ;;  %v1224_v46 = vld [vmem:[#allocation2 + $0x8] sm:$0xf]  ;;  %v1225_v47 = vld [vmem:[#allocation2 + $0xc] sm:$0xf]  ;;  %vm1467_vm6 = vcmask 1043456   ;;  %s2709_s9 = smov 16  }
 0x209   : > { %2128 = vmatprep.subr.bf16.mxu1 %v2702_v52  ;;  %v1324_v50 = vsel %vm1227_vm5, %v1224_v46, 0  ;;  %v1370_v51 = vsel %vm1227_vm5, %v1225_v47, 0  ;;  %v1460_v47 = vld [vmem:[#allocation3] sm:$0xf]  ;;  %s2710_s28 = smov 8   ;;  %s2711_s12 = smov 24  }
 0x20a   : > { %2111 = vmatpush3.bf16.msra.mxu0 %v2351_v53  ;;  %v1083_v7 = vunpack.c.0.s8 %v1082_v3  ;;  %v1115_v11 = vunpack.c.0.s8 %v1114_v6  ;;  %s2063_s16 = sshll.u32 %s2672_s20, 1  ;;  %vm1798_vm7 = vcmask 130048   ;;  %s1819_s30 = sshll.u32 %s528_s18, 4  ;;  %vm1800_vm8 = vcmask 195584   ;;  %s1820_s30 = int_to_ptr.vmem [resolvable:$true] %s1819_s30 }
 0x20b   : > { %2122 = vmatprep.subr.bf16.mxu0 %v2702_v52  ;;  %s3257_s6 = sld [smem:[#allocation39_spill]]  ;;  %s3258_s20 = sand.u32 1, %s2648_s14  }
 0x20c   : > { %v3047_v12 = vsub.s32 %v1083_v7, %v1085_v8  ;;  %v3049_v18 = vsub.s32 %v1115_v11, %v1085_v8  ;;  %s1804_s27 = scalar_lea.sflag [#allocation6], %s3258_s20  ;;  %s2552_s21 = scalar_lea.vmem %s1820_s30, 128 }
 0x20d   : > { %2113 = vmatmul.mubr.msk.bf16.vlgmr.msra.gmra.mxu0 %vm1024_vm4, %v1000_v54  ;;  %p2553_p4 = scmp.ne.s32.totalorder %s1820_s30, %s2552_s21  ;;  %s2712_s22 = smov [#allocation16]  }
 0x20e   : > { %2124 = vmatprep.mubr.msk.bf16.mxu0 %vm2703_vm3, %v2702_v52  ;;  %2123 = vmatpush3.bf16.xpose.msra.mxu0 %v1278_v1  ;;  %s2556_s3 = sshll.u32 %s2712_s22, 4  ;;  %s2557_s3 = int_to_ptr.vmem [resolvable:$false] %s2556_s3 }
 0x20f   : > { %2134 = vmatprep.subr.bf16.mxu0 %v2702_v52  ;;  %p2554_p8 = pnand %p2553_p4, %p2925_p11  ;;  %s2558_s7 = scalar_lea.vmem %s2557_s3, 256 }
 0x210   : > { %p2559_p10 = scmp.lt.s32.totalorder %s1820_s30, %s2557_s3  ;;  %p2560_p9 = scmp.lt.s32.totalorder %s2558_s7, %s2552_s21 }
 0x211   : > { %p2555_p1 = pneg %p2554_p8 }
 0x212   : > { %p2561_p12 = por %p2560_p9, %p2559_p10 }
 0x214   : > { %p2562_p3 = pnand %p2561_p12, %p2555_p1 }
 0x2cd   : > { %v1062_v56 = vpop.f32.mrf.mxu0 }
 0x2ce   : > { %v1063_v57 = vadd.f32 %v2046_v55, %v1062_v56 }
 0x2cf   : > { %v2114_v58 = vpop.f32.mrf.mxu0 }
 0x2d0   : > { %v1068_v59 = vmul.f32 0.35355338, %v1063_v57 }
 0x2d1   : > { %v1065_v60 = vpop.f32.mrf.mxu0 }
 0x2d2   : > { %1076 = vrot.lane.b32.xlu1 %v1068_v59, %s2704_s8  ;;  %1070 = vrot.lane.b32.xlu0 %v1068_v59, %s2705_s26  ;;  %v1219_v60 = vld [vmem:[%s2999_s1] sm:$0xf]  ;;  %s3256_s1 = sld [smem:[#allocation23_spill]] }
 0x2d3   : > { %v2115_v61 = vpop.f32.mrf.mxu0 }
 0x2d4   : > { %v1220_v61 = vsub.bf16 1065369472, %v1219_v60 }
 0x2d6   : > { %1073 = vrot.lane.b32.xlu0 %v1068_v59, %s2706_s2  ;;  %v1221_v62 = vmul.bf16 3323774492, %v1220_v61 }
 0x2d8   : > { %v1226_v63 = vunpack.c.l.bf16 %v1221_v62  ;;  %s1815_s11 = sadd.s32 %s3256_s1, %s2063_s16 }
 0x2d9   : > { %s2064_s25 = sshll.u32 %s1815_s11, 7 }
 0x2da   : > { %s3130_s4 = scalar_lea.hbm %s3257_s6, %s2064_s25 }
 0x344   : > { %v1077_v9 = vpop.permute.xlu1 %1076  ;;  %v1071_v10 = vpop.permute.xlu0 %1070 }
 0x345   : > { %v1095_v13 = vcombine.low %v1071_v10, %v1077_v9  ;;  %v1096_v14 = vcombine.high %v1071_v10, %v1077_v9 }
 0x347   : > { %v1103_v19 = vrot.slane %v1095_v13, %v3047_v12  ;;  %v1110_v20 = vrot.slane %v1096_v14, %v3047_v12 }
 0x348   : > { %v1074_v15 = vpop.permute.xlu0 %1073 }
 0x349   : > { %v1079_v16 = vcombine.low %v1068_v59, %v1074_v15  ;;  %v1080_v17 = vcombine.high %v1068_v59, %v1074_v15 }
 0x34b   : > { %v1087_v21 = vrot.slane %v1079_v16, %v3047_v12  ;;  %v1094_v22 = vrot.slane %v1080_v17, %v3047_v12 }
 0x34d   : > { %v1111_v23 = vcombine.low %v1087_v21, %v1103_v19  ;;  %v1112_v24 = vcombine.high %v1087_v21, %v1103_v19  ;;  %v1127_v25 = vcombine.low %v1094_v22, %v1110_v20  ;;  %v1128_v26 = vcombine.high %v1094_v22, %v1110_v20 }
 0x34f   : > { %v1119_v27 = vrot.slane %v1111_v23, %v3049_v18  ;;  %v1126_v28 = vrot.slane %v1112_v24, %v3049_v18  ;;  %v1135_v30 = vrot.slane %v1127_v25, %v3049_v18  ;;  %v1142_v31 = vrot.slane %v1128_v26, %v3049_v18 }
 0x351   : > { %v1147_v32 = vcombine.low %v1119_v27, %v1126_v28  ;;  %v2050_v33 = vcombine.high %v1119_v27, %v1126_v28  ;;  %v1163_v34 = vcombine.low %v1135_v30, %v1142_v31  ;;  %v2051_v35 = vcombine.high %v1135_v30, %v1142_v31 }
 0x353   : > { %v1154_v37 = vrot.slane %v1147_v32, %v3047_v12  ;;  %v1162_v38 = vrot.slane %v2050_v33, %v3047_v12  ;;  %v1170_v39 = vrot.slane %v1163_v34, %v3047_v12  ;;  %v1178_v40 = vrot.slane %v2051_v35, %v3047_v12 }
 0x355   : > { %v1179_v41 = vcombine.low %v1154_v37, %v1162_v38  ;;  %v1195_v42 = vcombine.low %v1170_v39, %v1178_v40  ;;  %v1180_v43 = vcombine.high %v1154_v37, %v1162_v38  ;;  %v1196_v29 = vcombine.high %v1170_v39, %v1178_v40 }
 0x357   : > { %v1187_v44 = vrot.slane %v1179_v41, %v3049_v18  ;;  %v1203_v45 = vrot.slane %v1195_v42, %v3049_v18  ;;  %v1194_v54 = vrot.slane %v1180_v43, %v3049_v18  ;;  %v1210_v55 = vrot.slane %v1196_v29, %v3049_v18 }
 0x359   : > { %v1211_v48 = vcombine.low %v1187_v44, %v1203_v45  ;;  %v1212_v49 = vcombine.high %v1187_v44, %v1203_v45  ;;  %v1213_v56 = vcombine.low %v1194_v54, %v1210_v55  ;;  %v1214_v57 = vcombine.high %v1194_v54, %v1210_v55 }
 0x35b   : > { %v1215_v36 = vpack.c.bf16 %v1211_v48, %v1211_v48  ;;  %v1216_v53 = vpack.c.bf16 %v1212_v49, %v1212_v49  ;;  %v1217_v58 = vpack.c.bf16 %v1213_v56, %v1213_v56  ;;  %v1218_v59 = vpack.c.bf16 %v1214_v57, %v1214_v57  ;;  %v1461_v48 = vld [vmem:[#allocation3 + $0x4] sm:$0xf]  ;;  %v1462_v56 = vld [vmem:[#allocation3 + $0x8] sm:$0xf] }
 0x35c   : > { %v1469_v49 = vsel %vm1467_vm6, %v1460_v47, 0  ;;  %v1561_v62 = vsel %vm1467_vm6, %v1462_v56, 0 }
 0x35d   : > { %2119 = vmatmul.mubr.msk.bf16.vlgmr.msra.gmra.mxu1 %vm1227_vm5, %v1215_v36  ;;  %2125 = vmatmul.mubr.msk.bf16.vlgmr.msra.gmra.mxu0 %vm1227_vm5, %v1216_v53 }
 0x35e   : > { %2129 = vmatpush3.bf16.xpose.msra.mxu1 %v1324_v50  ;;  %2135 = vmatpush3.bf16.xpose.msra.mxu0 %v1370_v51  ;;  %v1515_v50 = vsel %vm1467_vm6, %v1461_v48, 0 }
 0x35f   : > { %2130 = vmatprep.mubr.msk.bf16.mxu1 %vm2703_vm3, %v2702_v52  ;;  %2136 = vmatprep.mubr.msk.bf16.mxu0 %vm2703_vm3, %v2702_v52 }
 0x360   : > { %2140 = vmatprep.subr.bf16.mxu1 %v2702_v52  ;;  %2146 = vmatprep.subr.bf16.mxu0 %v2702_v52 }
 0x365   : > { %2131 = vmatmul.mubr.msk.bf16.vlgmr.msra.gmra.mxu1 %vm1227_vm5, %v1217_v58  ;;  %2137 = vmatmul.mubr.msk.bf16.vlgmr.msra.gmra.mxu0 %vm1227_vm5, %v1218_v59  ;;  %v1463_v59 = vld [vmem:[#allocation3 + $0xc] sm:$0xf] }
 0x366   : > { %2142 = vmatprep.mubr.msk.bf16.mxu1 %vm2703_vm3, %v2702_v52  ;;  %2148 = vmatprep.mubr.msk.bf16.mxu0 %vm2703_vm3, %v2702_v52 }
 0x367   : > { %2141 = vmatpush3.bf16.msra.mxu1 %v1469_v49  ;;  %2147 = vmatpush3.bf16.msra.mxu0 %v1515_v50 }
 0x368   : > { %2152 = vmatprep.subr.bf16.mxu1 %v2702_v52  ;;  %2158 = vmatprep.subr.bf16.mxu0 %v2702_v52 }
 0x41d   : > { %v1268_v0 = vpop.f32.mrf.mxu1  ;;  %v1314_v1 = vpop.f32.mrf.mxu0 }
 0x41e   : > { %v1269_v2 = vadd.f32 %v1268_v0, %v1226_v63  ;;  %v1315_v3 = vadd.f32 %v1314_v1, %v1226_v63  ;;  %v1607_v0 = vsel %vm1467_vm6, %v1463_v59, 0 }
 0x41f   : > { %v2120_v4 = vpop.f32.mrf.mxu1  ;;  %v2126_v5 = vpop.f32.mrf.mxu0 }
 0x420   : > { %v1412_v6 = vsel %vm1227_vm5, %v1269_v2, -inf  ;;  %v1415_v7 = vsel %vm1227_vm5, %v1315_v3, -inf }
 0x421   : > { %1413 = vmax.xlane.f32.xlu1 %v1412_v6  ;;  %v1271_v8 = vpop.f32.mrf.mxu1  ;;  %1416 = vmax.xlane.f32.xlu0 %v1415_v7  ;;  %v1317_v9 = vpop.f32.mrf.mxu0 }
 0x423   : > { %v2121_v10 = vpop.f32.mrf.mxu1  ;;  %v2127_v11 = vpop.f32.mrf.mxu0 }
 0x425   : > { %v1360_v13 = vpop.f32.mrf.mxu1  ;;  %v1406_v14 = vpop.f32.mrf.mxu0 }
 0x426   : > { %v1361_v15 = vadd.f32 %v1360_v13, %v1226_v63  ;;  %v1407_v16 = vadd.f32 %v1406_v14, %v1226_v63 }
 0x427   : > { %v2132_v17 = vpop.f32.mrf.mxu1  ;;  %v2138_v19 = vpop.f32.mrf.mxu0 }
 0x428   : > { %v1418_v20 = vsel %vm1227_vm5, %v1361_v15, -inf  ;;  %v1421_v21 = vsel %vm1227_vm5, %v1407_v16, -inf }
 0x429   : > { %v1363_v22 = vpop.f32.mrf.mxu1  ;;  %1419 = vmax.xlane.f32.xlu0 %v1418_v20  ;;  %1422 = vmax.xlane.f32.xlu1 %v1421_v21  ;;  %v1409_v23 = vpop.f32.mrf.mxu0 }
 0x42b   : > { %v2133_v24 = vpop.f32.mrf.mxu1  ;;  %v2139_v25 = vpop.f32.mrf.mxu0 }
 0x4aa   : > { %v1414_v26 = vpop.xlane.xlu1 %1413  ;;  %v1417_v27 = vpop.xlane.xlu0 %1416 }
 0x4ab   : > { %v1424_v28 = vsub.f32 %v1269_v2, %v1414_v26  ;;  %v1425_v30 = vsub.f32 %v1315_v3, %v1417_v27 }
 0x4ad   : > { %v1428_v31 = vmul.f32 1.442695, %v1424_v28  ;;  %v1430_v32 = vmul.f32 1.442695, %v1425_v30 }
 0x4af   : > { %2352 = vpow2.f32 %v1428_v31 }
 0x4b0   : > { %2354 = vpow2.f32 %v1430_v32 }
 0x4b2   : > { %v1420_v33 = vpop.xlane.xlu0 %1419  ;;  %v1423_v34 = vpop.xlane.xlu1 %1422 }
 0x4b3   : > { %v1426_v35 = vsub.f32 %v1361_v15, %v1420_v33  ;;  %v1427_v37 = vsub.f32 %v1407_v16, %v1423_v34 }
 0x4b5   : > { %v1432_v38 = vmul.f32 1.442695, %v1426_v35  ;;  %v1434_v39 = vmul.f32 1.442695, %v1427_v37 }
 0x4b7   : > { %2356 = vpow2.f32 %v1432_v38 }
 0x4b8   : > { %2358 = vpow2.f32 %v1434_v39 }
 0x4bc   : > { %v2353_v40 = vpop.eup %2352 }
 0x4bd   : > { %v2355_v41 = vpop.eup %2354  ;;  %v1436_v42 = vsel %vm1227_vm5, %v2353_v40, 0.0 }
 0x4be   : > { %1437 = vadd.xlane.f32.xlu0 %v1436_v42  ;;  %v1439_v43 = vsel %vm1227_vm5, %v2355_v41, 0.0 }
 0x4bf   : > { %1440 = vadd.xlane.f32.xlu1 %v1439_v43 }
 0x4c4   : > { %v2357_v29 = vpop.eup %2356 }
 0x4c5   : > { %v2359_v44 = vpop.eup %2358  ;;  %v1442_v45 = vsel %vm1227_vm5, %v2357_v29, 0.0 }
 0x4c6   : > { %1443 = vadd.xlane.f32.xlu0 %v1442_v45  ;;  %v1445_v46 = vsel %vm1227_vm5, %v2359_v44, 0.0 }
 0x4c7   : > { %1446 = vadd.xlane.f32.xlu1 %v1445_v46 }
 0x547   : > { %v1438_v51 = vpop.xlane.xlu0 %1437 }
 0x548   : > { %2360 = vrcp.f32 %v1438_v51  ;;  %v1441_v36 = vpop.xlane.xlu1 %1440 }
 0x549   : > { %2362 = vrcp.f32 %v1441_v36 }
 0x54f   : > { %v1444_v53 = vpop.xlane.xlu0 %1443 }
 0x550   : > { %2364 = vrcp.f32 %v1444_v53  ;;  %v1447_v54 = vpop.xlane.xlu1 %1446 }
 0x551   : > { %2366 = vrcp.f32 %v1447_v54 }
 0x555   : > { %v2361_v55 = vpop.eup %2360 }
 0x556   : > { %v2363_v57 = vpop.eup %2362  ;;  %v1452_v58 = vmul.f32 %v2361_v55, %v2353_v40 }
 0x557   : > { %v1453_v60 = vmul.f32 %v2363_v57, %v2355_v41 }
 0x558   : > { %v1456_v61 = vpack.c.bf16 %v1452_v58, %v1452_v58 }
 0x559   : > { %v1457_v63 = vpack.c.bf16 %v1453_v60, %v1453_v60 }
 0x55a   : > { %2143 = vmatmul.mubr.msk.bf16.vlgmr.msra.gmra.mxu1 %vm1227_vm5, %v1456_v61 }
 0x55b   : > { %2149 = vmatmul.mubr.msk.bf16.vlgmr.msra.gmra.mxu0 %vm1227_vm5, %v1457_v63  ;;  %2153 = vmatpush3.bf16.msra.mxu1 %v1561_v62 }
 0x55c   : > { %2159 = vmatpush3.bf16.msra.mxu0 %v1607_v0  ;;  %2154 = vmatprep.mubr.msk.bf16.mxu1 %vm2703_vm3, %v2702_v52 }
 0x55d   : > { %v2365_v1 = vpop.eup %2364  ;;  %2160 = vmatprep.mubr.msk.bf16.mxu0 %vm2703_vm3, %v2702_v52 }
 0x55e   : > { %v2367_v2 = vpop.eup %2366  ;;  %v1454_v3 = vmul.f32 %v2365_v1, %v2357_v29 }
 0x55f   : > { %v1455_v4 = vmul.f32 %v2367_v2, %v2359_v44 }
 0x560   : > { %v1458_v5 = vpack.c.bf16 %v1454_v3, %v1454_v3 }
 0x561   : > { %v1459_v6 = vpack.c.bf16 %v1455_v4, %v1455_v4 }
 0x562   : > { %2155 = vmatmul.mubr.msk.bf16.vlgmr.msra.gmra.mxu1 %vm1227_vm5, %v1458_v5 }
 0x563   : > { %2161 = vmatmul.mubr.msk.bf16.vlgmr.msra.gmra.mxu0 %vm1227_vm5, %v1459_v6 }
 0x61a   : > { %v1505_v7 = vpop.f32.mrf.mxu1 }
 0x61b   : > { %v1551_v8 = vpop.f32.mrf.mxu0 }
 0x61c   : > { %v2144_v9 = vpop.f32.mrf.mxu1 }
 0x61d   : > { %v2150_v10 = vpop.f32.mrf.mxu0 }
 0x61e   : > { %v1508_v11 = vpop.f32.mrf.mxu1 }
 0x61f   : > { %v1554_v13 = vpop.f32.mrf.mxu0 }
 0x620   : > { %v2145_v14 = vpop.f32.mrf.mxu1 }
 0x621   : > { %v2151_v15 = vpop.f32.mrf.mxu0 }
 0x622   : > { %v1597_v16 = vpop.f32.mrf.mxu1 }
 0x623   : > { %v1649_v17 = vcombine.low %v1505_v7, %v1597_v16  ;;  %v1650_v52 = vcombine.high %v1505_v7, %v1597_v16  ;;  %v1643_v19 = vpop.f32.mrf.mxu0 }
 0x624   : > { %v1665_v20 = vcombine.low %v1551_v8, %v1643_v19  ;;  %v1666_v21 = vcombine.high %v1551_v8, %v1643_v19  ;;  %v2156_v22 = vpop.f32.mrf.mxu1 }
 0x625   : > { %v1657_v23 = vrot.slane %v1649_v17, %v3047_v12  ;;  %v1664_v24 = vrot.slane %v1650_v52, %v3047_v12  ;;  %v2162_v25 = vpop.f32.mrf.mxu0 }
 0x626   : > { %v1673_v26 = vrot.slane %v1665_v20, %v3047_v12  ;;  %v1680_v27 = vrot.slane %v1666_v21, %v3047_v12  ;;  %v1600_v28 = vpop.f32.mrf.mxu1 }
 0x627   : > { %v1646_v30 = vpop.f32.mrf.mxu0 }
 0x628   : > { %v1681_v31 = vcombine.low %v1657_v23, %v1673_v26  ;;  %v1682_v32 = vcombine.high %v1657_v23, %v1673_v26  ;;  %v1697_v33 = vcombine.low %v1664_v24, %v1680_v27  ;;  %v1698_v34 = vcombine.high %v1664_v24, %v1680_v27  ;;  %v2157_v35 = vpop.f32.mrf.mxu1 }
 0x629   : > { %v2163_v37 = vpop.f32.mrf.mxu0 }
 0x62a   : > { %v1689_v38 = vrot.slane %v1681_v31, %v3049_v18  ;;  %v1696_v39 = vrot.slane %v1682_v32, %v3049_v18  ;;  %v1705_v40 = vrot.slane %v1697_v33, %v3049_v18  ;;  %v1712_v41 = vrot.slane %v1698_v34, %v3049_v18 }
 0x62c   : > { %v1717_v42 = vcombine.low %v1689_v38, %v1696_v39  ;;  %v2060_v43 = vcombine.high %v1689_v38, %v1696_v39  ;;  %v1733_v29 = vcombine.low %v1705_v40, %v1712_v41  ;;  %v2061_v44 = vcombine.high %v1705_v40, %v1712_v41 }
 0x62e   : > { %v1724_v45 = vrot.slane %v1717_v42, %v3047_v12  ;;  %v1732_v46 = vrot.slane %v2060_v43, %v3047_v12  ;;  %v1740_v47 = vrot.slane %v1733_v29, %v3047_v12  ;;  %v1748_v48 = vrot.slane %v2061_v44, %v3047_v12 }
 0x630   : > { %v1750_v49 = vcombine.high %v1724_v45, %v1732_v46  ;;  %v1766_v50 = vcombine.high %v1740_v47, %v1748_v48  ;;  %v1749_v51 = vcombine.low %v1724_v45, %v1732_v46  ;;  %v1765_v36 = vcombine.low %v1740_v47, %v1748_v48 }
 0x632   : > { %v1764_v53 = vrot.slane %v1750_v49, %v3049_v18  ;;  %v1780_v54 = vrot.slane %v1766_v50, %v3049_v18  ;;  %v1757_v55 = vrot.slane %v1749_v51, %v3049_v18  ;;  %v1773_v56 = vrot.slane %v1765_v36, %v3049_v18 }
 0x634   : > { %v1783_v57 = vcombine.low %v1764_v53, %v1780_v54  ;;  %v1782_v58 = vcombine.high %v1757_v55, %v1773_v56  ;;  %v1781_v59 = vcombine.low %v1757_v55, %v1773_v56  ;;  %v1784_v12 = vcombine.high %v1764_v53, %v1780_v54 }
 0x636   : > { %1790 = vrot.lane.b32.xlu1 %v1783_v57, %s2709_s9  ;;  %1786 = vrot.lane.b32.xlu0 %v1782_v58, %s2710_s28 }
 0x63a   : > { %1794 = vrot.lane.b32.xlu1 %v1784_v12, %s2711_s12 }
 0x6a8   : > { %v1791_v60 = vpop.permute.xlu1 %1790  ;;  %v1787_v61 = vpop.permute.xlu0 %1786 }
 0x6a9   : > { %v1797_v18 = vsel %vm1227_vm5, %v1781_v59, %v1787_v61 }
 0x6aa   : > { %v1799_v63 = vsel %vm1798_vm7, %v1797_v18, %v1791_v60 }
 0x6ac   : > { %v1795_v62 = vpop.permute.xlu1 %1794 }
 0x6ad   : > { %v1801_v0 = vsel %vm1800_vm8, %v1799_v63, %v1795_v62 }
 0x6ae   : > { %1802 = vst.msk [vmem:[%s528_s18] sm:$0xff] %vm1024_vm4, %v1801_v0 }
 0x6af   : > { %2565 = shalt.err (!%p2562_p3)
}
 0x6b0   : > { %s2566_s18 = scalar_lea.hbm %s3130_s4, 128  ;;  %s2570_s26 = scalar_lea.hbm %s3257_s6, 1024 }
 0x6b1   : > { %p2567_p6 = scmp.ne.s32.totalorder %s3130_s4, %s2566_s18  ;;  %p2571_p2 = scmp.lt.s32.totalorder %s3130_s4, %s3257_s6 }
 0x6b2   : > { %p2572_p5 = scmp.lt.s32.totalorder %s2570_s26, %s2566_s18 }
 0x6b3   : > { %p2568_p13 = pnand %p2567_p6, %p2925_p11 }
 0x6b4   : > { %p2573_p4 = por %p2572_p5, %p2571_p2 }
 0x6b5   : > { %p2569_p7 = pneg %p2568_p13 }
 0x6b7   : > { %p2574_p8 = pnand %p2573_p4, %p2569_p7 }
 0x6b9   : > { %2577 = shalt.err (!%p2574_p8)
}
 0x6ba   : > { %2190 = dma.vmem_to_hbm [thread:$0]  (%p2925_p11), %s1820_s30, 128, %s3130_s4, %s1804_s27  }
 0x6bb PF: > { %p2232_p1 = scmp.ge.s32.totalorder %s2684_s23, 2  ;;  %s1831_s9 = sand.u32 1, %s2644_s13  }
 0x6bc   : > { %s1832_s28 = scalar_lea.sflag [#allocation6], %s1831_s9 }
 0x6bd   : > { %p2216_p10 = pnand %p2232_p1, %p2939_p0 }
 0x6bf   : > { %p2217_p9 = pneg %p2216_p10 }
 0x6c1   : > { %2639 = dma.done.wait (%p2217_p9), %s1832_s28, 128  }
 0x6c2   : > { %2641 = vsyncadd (%p2217_p9), %s1832_s28, 4294967168  ;;  %s29_s23 = sadd.s32 1, %s2684_s23   ;;  %s3259_s0 = sld [smem:[#allocation22_spill]] }
 0x6c3   : > { %p26_p12 = scmp.ge.s32.totalorder %s29_s23, 10   ;;  %s3260_s18 = sld [smem:[#allocation28_spill]] }
 0x6c4   : > { %s3261_s19 = sld [smem:[#allocation24_spill]]  ;;  %s3265_s13 = smov %s2648_s14 }
 0x6c5   : > { %s3262_s20 = sld [smem:[#allocation25_spill]]  ;;  %s3266_s14 = smov %s2652_s15 }
 0x6c6   : > { %s3263_s21 = sld [smem:[#allocation26_spill]]  ;;  %s3267_s15 = smov %s2933_s24 }
 0x6c7   : > { %s3264_s22 = sld [smem:[#allocation27_spill]]  ;;  %s3268_s16 = smov %s2660_s17 }
 0x6c8   : > { %s3269_s17 = smov %s3259_s0  ;;  %28 = sbr.rel (!%p26_p12) target bundleno = 24 (0x18), region = 142 }
 0x6cd   :  { %1837 = vsyncpa [#allocation5], 1 }
 0x6ce   :  { %1839 = vsyncpa [#allocation5 + $0x1], 1 }
 0x6cf   :  { %1840 = vsyncpa [#allocation8], 1 }
 0x6d0   :  { %1841 = vsyncpa [#allocation11], 1 }
 0x6d1   :  { %1842 = vsyncpa [#allocation14], 1 }
 0x6d2   :  { %1843 = vsyncpa [#allocation6], 1 }
 0x6d3   :  { %1845 = vsyncpa [#allocation6 + $0x1], 1 }

</bundles_post_ra>
